<compile_context>
chip_gen: v5e
topology: v5e:2x2
jax: 0.10.0
libtpu: 0.0.40
codegen_flags: <defaults>
</compile_context>

<pallas_src>
import jax
import jax.numpy as jnp
from jax.experimental import pallas as pl
from jax.experimental.pallas import tpu as pltpu

H1, H2 = 100, 10            # logical hidden sizes
H1_PAD, H2_PAD = 128, 16    # sublane / MXU-contraction aligned paddings
SLAB_ROWS = H1_PAD + H2_PAD # 144 (multiple of 8)
LANES = 128


def mlp_kernel(x_ref, p_ref, o_ref):
    """x_ref: (1, Npad) batch-on-lanes.  p_ref: (144, 128) packed params.
    o_ref: (1, Npad) lane-dense output."""
    x = x_ref[...]                                  # (1, Npad)

    vec = p_ref[0:H1_PAD, :]                        # (128, 128) column-packed vectors
    w2t = p_ref[H1_PAD:H1_PAD + H2_PAD, :]          # (16, 128)  zero-padded W2 (out,in)

    w1 = vec[:, 0:1]                                # (128, 1)  layer-1 weight column
    b1 = vec[:, 1:2]                                # (128, 1)  layer-1 bias column
    w3 = vec[0:H2_PAD, 2:3]                         # (16, 1)   layer-3 weight column
    b2 = vec[0:H2_PAD, 3:4]                         # (16, 1)   layer-2 bias column
    b3 = vec[0:1, 4:5]                              # (1, 1)    layer-3 bias

    # Layer 1: K=1 outer product on the VPU (no MXU round-trip).
    # Padded rows 100..127 have w1=b1=0 -> h1 rows are exactly 0 there.
    h1 = jnp.maximum(w1 * x + b1, 0.0)              # (128, Npad)

    # Layer 2: the only real matmul -> MXU, contraction padded to 128.
    h2 = jnp.dot(w2t, h1, preferred_element_type=jnp.float32)  # (16, Npad)
    h2 = jnp.maximum(h2 + b2, 0.0)                  # padded rows stay 0

    # Layer 3: K=10 -> VPU multiply + sublane reduce (no MXU).
    out = jnp.sum(w3 * h2, axis=0, keepdims=True) + b3          # (1, Npad)
    o_ref[...] = out.astype(o_ref.dtype)


def pack_params(params):
    """Pack w1,b1,w2,b2,w3,b3 into one (144,128) aligned f32 slab.

    Rows 0..127  : col0=w1, col1=b1, col2=w3, col3=b2, col4[row0]=b3
    Rows 128..143: W2^T (out,in) = PyTorch weight (10,100), zero padded.
    """
    slab = jnp.zeros((SLAB_ROWS, LANES), jnp.float32)
    slab = slab.at[:H1, 0].set(params["w1"][0, :])          # (100,)
    slab = slab.at[:H1, 1].set(params["b1"][0, :])          # (100,)
    slab = slab.at[:H2, 2].set(params["w3"][:, 0])          # (10,)
    slab = slab.at[:H2, 3].set(params["b2"][0, :])          # (10,)
    slab = slab.at[0, 4].set(params["b3"][0, 0])            # scalar
    slab = slab.at[H1_PAD:H1_PAD + H2, :H1].set(params["w2"].T)  # (10,100)
    return slab


def _net_forward(x, params):
    """x: (N, 1) f32. params dict with weights stored as (in, out)."""
    n = x.shape[0]
    n_pad = ((n + LANES - 1) // LANES) * LANES
    # Lane-dense, zero-padded input: batch on lanes.
    x_lane = jnp.zeros((1, n_pad), jnp.float32).at[0, :n].set(x[:, 0])
    slab = pack_params(params)

    vmem = pl.BlockSpec(memory_space=pltpu.MemorySpace.VMEM)
    out = pl.pallas_call(
        mlp_kernel,
        out_shape=jax.ShapeDtypeStruct((1, n_pad), jnp.float32),
        in_specs=[vmem, vmem],
        out_specs=vmem,
    )(x_lane, slab)
    # Drop padded lanes (they carry garbage from padded x) and restore (N, 1).
    return out[0, :n].reshape(n, 1)


net_forward = jax.jit(_net_forward)


def init_params(key):
    """PyTorch-Linear-style init U(-1/sqrt(fan_in), 1/sqrt(fan_in)); weights (in,out)."""
    dims = [(1, 100), (100, 10), (10, 1)]
    params = {}
    keys = jax.random.split(key, 2 * len(dims))
    for i, (fan_in, fan_out) in enumerate(dims):
        bound = 1.0 / (fan_in ** 0.5)
        params[f"w{i + 1}"] = jax.random.uniform(
            keys[2 * i], (fan_in, fan_out), minval=-bound, maxval=bound,
            dtype=jnp.float32)
        params[f"b{i + 1}"] = jax.random.uniform(
            keys[2 * i + 1], (1, fan_out), minval=-bound, maxval=bound,
            dtype=jnp.float32)
    return params


def reference_forward(x, params):
    """Pure-JAX reference (highest precision dots) for correctness check."""
    hp = jax.lax.Precision.HIGHEST
    h = jnp.maximum(jnp.dot(x, params["w1"], precision=hp) + params["b1"], 0.0)
    h = jnp.maximum(jnp.dot(h, params["w2"], precision=hp) + params["b2"], 0.0)
    return jnp.dot(h, params["w3"], precision=hp) + params["b3"]


if __name__ == "__main__":
    key = jax.random.PRNGKey(0)
    params = init_params(key)

    # Same input semantics as the PyTorch script:
    # torch.unsqueeze(torch.linspace(-1, 1, 100), dim=1) -> (100, 1)
    x = jnp.linspace(-1.0, 1.0, 100, dtype=jnp.float32).reshape(100, 1)

    y = net_forward(x, params)
    y = jax.block_until_ready(y)

    y_ref = reference_forward(x, params)
    assert y.shape == (100, 1)
    assert jnp.allclose(y, y_ref, atol=1e-3, rtol=1e-3)

    print("KERNEL_OK")
</pallas_src>

<mosaic_0001>
module attributes {stable_mosaic.version = 11 : i64} {
  func.func @mlp_kernel(%arg0: memref<1x128xf32, #tpu.memory_space<vmem>>, %arg1: memref<144x128xf32, #tpu.memory_space<vmem>>, %arg2: memref<1x128xf32, #tpu.memory_space<vmem>>) attributes {dimension_semantics = [], scalar_prefetch = 0 : i64, scratch_operands = 0 : i64, tpu.core_type = #tpu.core_type<tc>} {
    %c0 = arith.constant 0 : index
    %c0_0 = arith.constant 0 : index
    %0 = vector.load %arg0[%c0, %c0_0] : memref<1x128xf32, #tpu.memory_space<vmem>>, vector<1x128xf32>
    %c0_1 = arith.constant 0 : index
    %c0_2 = arith.constant 0 : index
    %1 = vector.load %arg1[%c0_1, %c0_2] : memref<144x128xf32, #tpu.memory_space<vmem>>, vector<128x128xf32>
    %c128 = arith.constant 128 : index
    %c0_3 = arith.constant 0 : index
    %2 = vector.load %arg1[%c128, %c0_3] : memref<144x128xf32, #tpu.memory_space<vmem>>, vector<16x128xf32>
    %3 = vector.extract_strided_slice %1 {offsets = [0, 0], sizes = [128, 1], strides = [1, 1]} : vector<128x128xf32> to vector<128x1xf32>
    %4 = vector.extract_strided_slice %1 {offsets = [0, 1], sizes = [128, 1], strides = [1, 1]} : vector<128x128xf32> to vector<128x1xf32>
    %5 = vector.extract_strided_slice %1 {offsets = [0, 2], sizes = [16, 1], strides = [1, 1]} : vector<128x128xf32> to vector<16x1xf32>
    %6 = vector.extract_strided_slice %1 {offsets = [0, 3], sizes = [16, 1], strides = [1, 1]} : vector<128x128xf32> to vector<16x1xf32>
    %7 = vector.extract_strided_slice %1 {offsets = [0, 4], sizes = [1, 1], strides = [1, 1]} : vector<128x128xf32> to vector<1x1xf32>
    %8 = vector.broadcast %3 : vector<128x1xf32> to vector<128x128xf32>
    %9 = vector.broadcast %0 : vector<1x128xf32> to vector<128x128xf32>
    %10 = arith.mulf %8, %9 : vector<128x128xf32>
    %11 = vector.broadcast %4 : vector<128x1xf32> to vector<128x128xf32>
    %12 = arith.addf %10, %11 : vector<128x128xf32>
    %cst = arith.constant 0.000000e+00 : f32
    %13 = vector.broadcast %cst : f32 to vector<128x128xf32>
    %14 = arith.maximumf %12, %13 : vector<128x128xf32>
    %cst_4 = arith.constant dense<0.000000e+00> : vector<16x128xf32>
    %15 = tpu.matmul %2, %14, %cst_4 {dimension_numbers = #tpu.dot_dimension_numbers<[1], [0], [0], [1], [0, 0, 1, 1], [], []>} : vector<16x128xf32>, vector<128x128xf32>, vector<16x128xf32> -> vector<16x128xf32>
    %16 = vector.broadcast %6 : vector<16x1xf32> to vector<16x128xf32>
    %17 = arith.addf %15, %16 : vector<16x128xf32>
    %cst_5 = arith.constant 0.000000e+00 : f32
    %18 = vector.broadcast %cst_5 : f32 to vector<16x128xf32>
    %19 = arith.maximumf %17, %18 : vector<16x128xf32>
    %20 = vector.broadcast %5 : vector<16x1xf32> to vector<16x128xf32>
    %21 = arith.mulf %20, %19 : vector<16x128xf32>
    %cst_6 = arith.constant dense<0.000000e+00> : vector<128xf32>
    %22 = vector.multi_reduction <add>, %21, %cst_6 [0] : vector<16x128xf32> to vector<128xf32>
    %23 = vector.shape_cast %22 : vector<128xf32> to vector<1x128xf32>
    %24 = vector.broadcast %7 : vector<1x1xf32> to vector<1x128xf32>
    %25 = arith.addf %23, %24 : vector<1x128xf32>
    %c0_7 = arith.constant 0 : index
    %c0_8 = arith.constant 0 : index
    %26 = vector.load %arg2[%c0_7, %c0_8] : memref<1x128xf32, #tpu.memory_space<vmem>>, vector<1x128xf32>
    tpu.vector_store %arg2[%c0_7, %c0_8], %25 {strides = array<i32>} : memref<1x128xf32, #tpu.memory_space<vmem>>, vector<1x128xf32>,
    return
  }
}

</mosaic_0001>

<bundles_post_ra>
// kernel: _net_forward.1
= control target key start
LH: loop header
LB: loop body
LE: loop exit
PB: predicated region body
PF: predicated region fallthrough
CT: control target
= control target key end

     0   :  { %v329_v0 = vmov 1   ;;  %v330_v4 = vmov 0   ;;  %s440_s1 = inlined_call_operand.vmem [shape: f32[144,128], index: 1, kind: input, shape index: {}]   ;;  %s441_s0 = inlined_call_operand.vmem [shape: f32[1,128], index: 0, kind: input, shape index: {}]   ;;  %s442_s2 = inlined_call_operand.vmem [shape: f32[1,128], index: 2, kind: output, shape index: {}]  }
   0x1   :  { %310 = vset.pattern.permute.xlu0 %v329_v0  ;;  %306 = vset.pattern.permute.xlu1 %v329_v0  ;;  %v27_v1 = vld [vmem:[%s440_s1 + $0x78] sm:$0xff]  ;;  %v25_v2 = vld [vmem:[%s440_s1 + $0x68] sm:$0xff]  ;;  %v26_v3 = vld [vmem:[%s440_s1 + $0x70] sm:$0xff] }
   0x2   :  { %190 = vperm.xlu1 %306, %v27_v1   ;;  %182 = vperm.xlu0 %310, %v25_v2   ;;  %v24_v5 = vld [vmem:[%s440_s1 + $0x60] sm:$0xff]  ;;  %v23_v6 = vld [vmem:[%s440_s1 + $0x58] sm:$0xff]  ;;  %v22_v7 = vld [vmem:[%s440_s1 + $0x50] sm:$0xff] }
   0x3   :  { %308 = vset.pattern.permute.xlu2 %v329_v0  ;;  %v21_v8 = vld [vmem:[%s440_s1 + $0x48] sm:$0xff]  ;;  %v16_v9 = vld [vmem:[%s440_s1 + $0x20] sm:$0xff]  ;;  %v19_v11 = vld [vmem:[%s440_s1 + $0x38] sm:$0xff] }
   0x4   :  { %186 = vperm.xlu2 %308, %v26_v3   ;;  %v20_v10 = vld [vmem:[%s440_s1 + $0x40] sm:$0xff]  ;;  %v15_v12 = vld [vmem:[%s440_s1 + $0x18] sm:$0xff]  ;;  %v18_v13 = vld [vmem:[%s440_s1 + $0x30] sm:$0xff] }
   0x5   :  { %v388_v14 = vld [vmem:[%s440_s1] sm:$0xff]  ;;  %v17_v15 = vld [vmem:[%s440_s1 + $0x28] sm:$0xff]  ;;  %v14_v16 = vld [vmem:[%s440_s1 + $0x10] sm:$0xff] }
   0x6   :  { %v400_v17 = vld [vmem:[%s440_s1 + $0x8] sm:$0xff]  ;;  %v408_v23 = vld [vmem:[%s441_s0] ss:$0 sm:$0xff] }
   0xa   :  { %307 = vset.pattern.permute.xlu1 %v330_v4  ;;  %311 = vset.pattern.permute.xlu0 %v330_v4 }
   0xb   :  { %107 = vperm.xlu0 %311, %v27_v1   ;;  %97 = vperm.xlu1 %307, %v25_v2  }
   0xc   :  { %309 = vset.pattern.permute.xlu2 %v330_v4 }
   0xd   :  { %92 = vperm.xlu2 %309, %v24_v5  }
  0x13   :  { %102 = vperm.xlu0 %311, %v26_v3   ;;  %87 = vperm.xlu1 %307, %v23_v6  }
  0x15   :  { %312 = vset.pattern.permute.xlu2 %v329_v0 }
  0x16   :  { %178 = vperm.xlu2 %312, %v24_v5  }
  0x1b   :  { %82 = vperm.xlu1 %307, %v22_v7   ;;  %77 = vperm.xlu0 %311, %v21_v8  }
  0x1e   :  { %174 = vperm.xlu2 %312, %v23_v6  }
  0x23   :  { %313 = vset.pattern.permute.xlu1 %v329_v0  ;;  %52 = vperm.xlu0 %311, %v16_v9  }
  0x24   :  { %170 = vperm.xlu1 %313, %v22_v7  }
  0x26   :  { %314 = vset.pattern.permute.xlu2 %v330_v4 }
  0x27   :  { %72 = vperm.xlu2 %314, %v20_v10  }
  0x2b   :  { %317 = vset.pattern.permute.xlu0 %v329_v0 }
  0x2c   :  { %166 = vperm.xlu1 %313, %v21_v8   ;;  %162 = vperm.xlu0 %317, %v20_v10  }
  0x2f   :  { %67 = vperm.xlu2 %314, %v19_v11  }
  0x34   :  { %315 = vset.pattern.permute.xlu1 %v330_v4  ;;  %142 = vperm.xlu0 %317, %v15_v12  }
  0x35   :  { %62 = vperm.xlu1 %315, %v18_v13  }
  0x37   :  { %316 = vset.pattern.permute.xlu2 %v329_v0 }
  0x38   :  { %158 = vperm.xlu2 %316, %v19_v11  }
  0x3c   :  { %130 = vperm.xlu0 %317, %v388_v14  }
  0x3d   :  { %57 = vperm.xlu1 %315, %v17_v15  }
  0x40   :  { %154 = vperm.xlu2 %316, %v18_v13   ;;  %v332_v13 = vmov 2  }
  0x44   :  { %324 = vset.pattern.permute.xlu0 %v332_v13 }
  0x45   :  { %318 = vset.pattern.permute.xlu1 %v329_v0  ;;  %259 = vperm.xlu0 %324, %v388_v14  }
  0x46   :  { %150 = vperm.xlu1 %318, %v17_v15  }
  0x48   :  { %319 = vset.pattern.permute.xlu2 %v330_v4 }
  0x49   :  { %47 = vperm.xlu2 %319, %v15_v12   ;;  %v331_v12 = vmov 3  }
  0x4e   :  { %146 = vperm.xlu1 %318, %v16_v9  }
  0x51   :  { %42 = vperm.xlu2 %319, %v14_v16  }
  0x56   :  { %320 = vset.pattern.permute.xlu1 %v330_v4 }
  0x57   :  { %37 = vperm.xlu1 %320, %v400_v17  }
  0x59   :  { %321 = vset.pattern.permute.xlu2 %v329_v0 }
  0x5a   :  { %138 = vperm.xlu2 %321, %v14_v16  }
  0x5e   :  { %v187_v18 = vpop.permute.xlu2 %186 }
  0x5f   :  { %32 = vperm.xlu1 %320, %v388_v14  }
  0x62   :  { %134 = vperm.xlu2 %321, %v400_v17  }
  0x67   :  { %v93_v19 = vpop.permute.xlu2 %92  ;;  %322 = vset.pattern.permute.xlu1 %v331_v12 }
  0x68   :  { %v125_v33 = vmul.f32 %v408_v23, %v93_v19  ;;  %226 = vperm.xlu1 %322, %v388_v14  }
  0x6a   :  { %323 = vset.pattern.permute.xlu2 %v331_v12 }
  0x6b   :  { %230 = vperm.xlu2 %323, %v400_v17  }
  0x70   :  { %v179_v20 = vpop.permute.xlu2 %178  ;;  %325 = vset.pattern.permute.xlu1 %v332_v13 }
  0x71   :  { %v205_v39 = vadd.f32 %v179_v20, %v125_v33  ;;  %263 = vperm.xlu1 %325, %v400_v17  }
  0x73   :  { %v221_v45 = vmax.f32 %v205_v39, 0.0 }
  0x74   :  { %v191_v21 = vpop.permute.xlu1 %190  ;;  %v183_v22 = vpop.permute.xlu0 %182 }
  0x78   :  { %v175_v24 = vpop.permute.xlu2 %174 }
  0x7d   :  { %v108_v25 = vpop.permute.xlu0 %107  ;;  %v98_v26 = vpop.permute.xlu1 %97 }
  0x7e   :  { %v128_v27 = vmul.f32 %v408_v23, %v108_v25  ;;  %v126_v30 = vmul.f32 %v408_v23, %v98_v26 }
  0x80   :  { %v208_v28 = vadd.f32 %v191_v21, %v128_v27  ;;  %v206_v38 = vadd.f32 %v183_v22, %v126_v30 }
  0x81   :  { %v73_v35 = vpop.permute.xlu2 %72 }
  0x82   :  { %v224_v29 = vmax.f32 %v208_v28, 0.0  ;;  %v222_v41 = vmax.f32 %v206_v38, 0.0  ;;  %v121_v55 = vmul.f32 %v408_v23, %v73_v35  ;;  %v333_v28 = vmov 4  }
  0x83   :  { %327 = vset.pattern.permute.xlu0 %v333_v28  ;;  %326 = vset.pattern.permute.xlu2 %v333_v28 }
  0x84   :  { %233 = vmatpush.msra.mxu0 %v224_v29  ;;  %285 = vmatpush.msra.mxu1 %v224_v29 }
  0x85   :  { %v103_v31 = vpop.permute.xlu0 %102  ;;  %v88_v32 = vpop.permute.xlu1 %87  ;;  %276 = vperm.xlu2 %326, %v388_v14   ;;  %v28_v14 = vld [vmem:[%s440_s1 + $0x80] sm:$0xff] }
  0x86   :  { %v127_v34 = vmul.f32 %v408_v23, %v103_v31  ;;  %v124_v36 = vmul.f32 %v408_v23, %v88_v32 }
  0x88   :  { %v207_v37 = vadd.f32 %v187_v18, %v127_v34  ;;  %v204_v42 = vadd.f32 %v175_v24, %v124_v36 }
  0x89   :  { %v68_v46 = vpop.permute.xlu2 %67 }
  0x8a   :  { %v223_v40 = vmax.f32 %v207_v37, 0.0  ;;  %v220_v47 = vmax.f32 %v204_v42, 0.0  ;;  %v120_v56 = vmul.f32 %v408_v23, %v68_v46 }
  0x8c   :  { %234 = vmatpush.msra.mxu0 %v223_v40  ;;  %286 = vmatpush.msra.mxu1 %v223_v40  ;;  %v29_v40 = vld [vmem:[%s440_s1 + $0x88] sm:$0xff] }
  0x8d   :  { %v83_v43 = vpop.permute.xlu1 %82  ;;  %v78_v44 = vpop.permute.xlu0 %77 }
  0x8e   :  { %235 = vmatpush.msra.mxu0 %v222_v41  ;;  %287 = vmatpush.msra.mxu1 %v222_v41  ;;  %v123_v48 = vmul.f32 %v408_v23, %v83_v43  ;;  %v122_v54 = vmul.f32 %v408_v23, %v78_v44 }
  0x90   :  { %236 = vmatpush.msra.mxu0 %v221_v45  ;;  %288 = vmatpush.msra.mxu1 %v221_v45 }
  0x92   :  { %237 = vmatpush.msra.mxu0 %v220_v47  ;;  %289 = vmatpush.msra.mxu1 %v220_v47  ;;  %v159_v53 = vpop.permute.xlu2 %158 }
  0x93   :  { %v200_v61 = vadd.f32 %v159_v53, %v120_v56 }
  0x95   :  { %v53_v49 = vpop.permute.xlu0 %52  ;;  %v216_v1 = vmax.f32 %v200_v61, 0.0 }
  0x96   :  { %v171_v50 = vpop.permute.xlu1 %170  ;;  %v117_v19 = vmul.f32 %v408_v23, %v53_v49 }
  0x97   :  { %v203_v51 = vadd.f32 %v171_v50, %v123_v48 }
  0x99   :  { %v219_v52 = vmax.f32 %v203_v51, 0.0 }
  0x9a   :  { %v155_v63 = vpop.permute.xlu2 %154 }
  0x9b   :  { %238 = vmatpush.msra.mxu0 %v219_v52  ;;  %290 = vmatpush.msra.mxu1 %v219_v52 }
  0x9e   :  { %v167_v57 = vpop.permute.xlu1 %166  ;;  %v163_v58 = vpop.permute.xlu0 %162 }
  0x9f   :  { %v202_v59 = vadd.f32 %v167_v57, %v122_v54  ;;  %v201_v60 = vadd.f32 %v163_v58, %v121_v55 }
  0xa1   :  { %v218_v62 = vmax.f32 %v202_v59, 0.0  ;;  %v217_v0 = vmax.f32 %v201_v60, 0.0 }
  0xa3   :  { %239 = vmatpush.msra.mxu0 %v218_v62  ;;  %291 = vmatpush.msra.mxu1 %v218_v62  ;;  %v48_v5 = vpop.permute.xlu2 %47 }
  0xa4   :  { %v116_v16 = vmul.f32 %v408_v23, %v48_v5 }
  0xa5   :  { %240 = vmatpush.msra.mxu0 %v217_v0  ;;  %292 = vmatpush.msra.mxu1 %v217_v0 }
  0xa6   :  { %v143_v18 = vpop.permute.xlu0 %142 }
  0xa7   :  { %v63_v2 = vpop.permute.xlu1 %62  ;;  %241 = vmatpush.msra.mxu0 %v216_v1  ;;  %293 = vmatpush.msra.mxu1 %v216_v1  ;;  %v196_v24 = vadd.f32 %v143_v18, %v116_v16 }
  0xa8   :  { %v119_v3 = vmul.f32 %v408_v23, %v63_v2 }
  0xa9   :  { %v212_v29 = vmax.f32 %v196_v24, 0.0 }
  0xaa   :  { %v199_v4 = vadd.f32 %v155_v63, %v119_v3 }
  0xab   :  { %v43_v8 = vpop.permute.xlu2 %42 }
  0xac   :  { %v215_v6 = vmax.f32 %v199_v4, 0.0  ;;  %v115_v20 = vmul.f32 %v408_v23, %v43_v8 }
  0xae   :  { %242 = vmatpush.msra.mxu0 %v215_v6  ;;  %294 = vmatpush.msra.mxu1 %v215_v6  ;;  %v131_v37 = vpop.permute.xlu0 %130 }
  0xaf   :  { %v58_v7 = vpop.permute.xlu1 %57 }
  0xb0   :  { %v118_v9 = vmul.f32 %v408_v23, %v58_v7 }
  0xb4   :  { %v139_v21 = vpop.permute.xlu2 %138 }
  0xb5   :  { %v195_v26 = vadd.f32 %v139_v21, %v115_v20 }
  0xb7   :  { %v211_v30 = vmax.f32 %v195_v26, 0.0  ;;  %v260_v46 = vpop.permute.xlu0 %259 }
  0xb8   :  { %v151_v10 = vpop.permute.xlu1 %150 }
  0xb9   :  { %v198_v11 = vadd.f32 %v151_v10, %v118_v9 }
  0xbb   :  { %v214_v15 = vmax.f32 %v198_v11, 0.0 }
  0xbc   :  { %v135_v33 = vpop.permute.xlu2 %134 }
  0xbd   :  { %243 = vmatpush.msra.mxu0 %v214_v15  ;;  %295 = vmatpush.msra.mxu1 %v214_v15 }
  0xc0   :  { %v147_v22 = vpop.permute.xlu1 %146 }
  0xc1   :  { %v197_v25 = vadd.f32 %v147_v22, %v117_v19 }
  0xc3   :  { %v213_v27 = vmax.f32 %v197_v25, 0.0 }
  0xc5   :  { %244 = vmatpush.msra.mxu0 %v213_v27  ;;  %296 = vmatpush.msra.mxu1 %v213_v27  ;;  %v231_v42 = vpop.permute.xlu2 %230 }
  0xc7   :  { %245 = vmatpush.msra.mxu0 %v212_v29  ;;  %297 = vmatpush.msra.mxu1 %v212_v29 }
  0xc9   :  { %v38_v31 = vpop.permute.xlu1 %37  ;;  %246 = vmatpush.msra.mxu0 %v211_v30  ;;  %298 = vmatpush.msra.mxu1 %v211_v30 }
  0xca   :  { %v114_v32 = vmul.f32 %v408_v23, %v38_v31 }
  0xcc   :  { %v194_v34 = vadd.f32 %v135_v33, %v114_v32 }
  0xce   :  { %v210_v35 = vmax.f32 %v194_v34, 0.0 }
  0xd0   :  { %247 = vmatpush.msra.mxu0 %v210_v35  ;;  %299 = vmatpush.msra.mxu1 %v210_v35 }
  0xd1   :  { %v33_v17 = vpop.permute.xlu1 %32 }
  0xd2   :  { %v113_v36 = vmul.f32 %v408_v23, %v33_v17 }
  0xd4   :  { %v193_v38 = vadd.f32 %v131_v37, %v113_v36 }
  0xd6   :  { %v209_v39 = vmax.f32 %v193_v38, 0.0 }
  0xd8   :  { %248 = vmatpush.msra.mxu0 %v209_v39  ;;  %300 = vmatpush.msra.mxu1 %v209_v39 }
  0xd9   :  { %249 = vmatmul.f32.vlgmr.msra.gmra.mxu0 %v28_v14  ;;  %252 = vmatmul.f32.vlgmr.msra.gmra.mxu1 %v29_v40 }
  0xda   :  { %v227_v41 = vpop.permute.xlu1 %226 }
  0xdf   :  { %v277_v58 = vpop.permute.xlu2 %276 }
  0xe3   :  { %v264_v47 = vpop.permute.xlu1 %263 }
 0x156   :  { %v250_v43 = vpop.f32.mrf.mxu0  ;;  %v253_v44 = vpop.f32.mrf.mxu1 }
 0x157   :  { %v251_v23 = vadd.f32 %v250_v43, %v227_v41  ;;  %v254_v45 = vadd.f32 %v253_v44, %v231_v42 }
 0x159   :  { %v256_v48 = vmax.f32 %v251_v23, 0.0  ;;  %v257_v49 = vmax.f32 %v254_v45, 0.0 }
 0x15b   :  { %v266_v50 = vmul.f32 %v260_v46, %v256_v48  ;;  %v267_v51 = vmul.f32 %v264_v47, %v257_v49 }
 0x15d   :  { %v268_v52 = vadd.f32 %v267_v51, %v266_v50 }
 0x15f   :  { %v269_v53 = vrot.slane %v268_v52, 4 }
 0x161   :  { %v270_v54 = vadd.f32 %v269_v53, %v268_v52 }
 0x163   :  { %v271_v55 = vrot.slane %v270_v54, 2 }
 0x165   :  { %v272_v56 = vadd.f32 %v271_v55, %v270_v54 }
 0x167   :  { %v273_v57 = vrot.slane %v272_v56, 1 }
 0x169   :  { %v274_v59 = vadd.f32 %v273_v57, %v272_v56 }
 0x16b   :  { %v279_v60 = vadd.f32 %v277_v58, %v274_v59 }
 0x16d   :  { %280 = vst [vmem:[%s442_s2] sm:$0x1] %v279_v60 }

</bundles_post_ra>
